<compile_context>
chip_gen: v5e
topology: v5e:2x2
jax: 0.10.0
libtpu: 0.0.40
codegen_flags: <defaults>
</compile_context>

<pallas_src>
import functools
import math

import jax
import jax.numpy as jnp
from jax.experimental import pallas as pl
from jax.experimental.pallas import tpu as pltpu

DISCOUNT = 0.99  # gamma (unused by forward, kept for fidelity with the module)


def _policy_fwd_kernel(x_ref, w1_ref, b1_ref, w2_ref, b2_ref, bits_ref, o_ref,
                       *, steps_per_block, batch):
    TS = steps_per_block
    xt = x_ref[...]                                                # (S, B*TS) f32

    # layer1 + tanh:  W1 (H, S) bf16  @  x^T (S, cols) bf16  -> f32 accumulate
    h = jnp.tanh(
        jnp.dot(w1_ref[...], xt.astype(jnp.bfloat16),
                preferred_element_type=jnp.float32) + b1_ref[...])  # (H, cols)

    # layer2:  W2 (A, H) bf16  @  h (H, cols) bf16  -> f32 accumulate
    logits = (
        jnp.dot(w2_ref[...], h.astype(jnp.bfloat16),
                preferred_element_type=jnp.float32) + b2_ref[...])  # (A, cols)

    # Dropout(p=0.5), training mode: keep w.p. 0.5 (high bit of random u32),
    # scale kept values by 1/(1-p) = 2.  Pure arithmetic, no select.
    keep2 = (bits_ref[...] >> 31).astype(jnp.float32) * 2.0         # {0.0, 2.0}
    d = logits * keep2                                              # (A, cols)

    # log_softmax over dim=0 of each step's (B, A) matrix.  The per-step batch
    # lives as B contiguous lane slabs of TS columns, so the reduction is just
    # elementwise max / sum-of-exp across the slabs (all VPU/EUP, lane-dense).
    slabs = [d[:, b * TS:(b + 1) * TS] for b in range(batch)]       # each (A, TS)
    m = slabs[0]
    for s in slabs[1:]:
        m = jnp.maximum(m, s)
    ssum = jnp.exp(slabs[0] - m)
    for s in slabs[1:]:
        ssum = ssum + jnp.exp(s - m)
    lse = m + jnp.log(ssum)
    for b in range(batch):
        o_ref[:, b * TS:(b + 1) * TS] = (slabs[b] - lse).astype(o_ref.dtype)


def reinforce_policy_forward(x_steps, w1, b1, w2, b2, dropout_key,
                             *, steps_per_block=128):
    """Batched REINFORCE forward over a rollout.

    x_steps: (num_steps, B, state_dim) f32 -- num_steps independent forward()
    calls of the module.  Weights are in torch nn.Linear layout:
    w1 (H, S), b1 (H, 1), w2 (A, H), b2 (A, 1).
    Returns (num_steps, B, A) f32, log_softmax over dim=0 (the batch axis).
    """
    num_steps, batch, state_dim = x_steps.shape
    hidden_dim = w1.shape[0]
    action_dim = w2.shape[0]
    assert num_steps % steps_per_block == 0
    nb = num_steps // steps_per_block
    cols_per_block = batch * steps_per_block
    total_cols = nb * cols_per_block

    # Lane-dense transposed layout: within block i, columns are ordered as
    # [b=0 step slab | b=1 step slab | ...] so the dim=0 softmax is an
    # elementwise reduction across contiguous lane slabs inside the kernel.
    xt = x_steps.reshape(nb, steps_per_block, batch, state_dim)
    xt = jnp.transpose(xt, (3, 0, 2, 1)).reshape(state_dim, total_cols)

    # TODO(synk): PyTorch's exact dropout RNG stream cannot be reproduced; we
    # draw an equivalent Bernoulli(0.5) mask from jax.random (training mode).
    bits = jax.random.bits(dropout_key, (action_dim, total_cols),
                           dtype=jnp.uint32)

    kernel = functools.partial(_policy_fwd_kernel,
                               steps_per_block=steps_per_block, batch=batch)

    out_t = pl.pallas_call(
        kernel,
        out_shape=jax.ShapeDtypeStruct((action_dim, total_cols), jnp.float32),
        grid=(nb,),
        in_specs=[
            pl.BlockSpec((state_dim, cols_per_block), lambda i: (0, i)),   # x^T slab
            pl.BlockSpec((hidden_dim, state_dim), lambda i: (0, 0)),       # W1 (resident)
            pl.BlockSpec((hidden_dim, 1), lambda i: (0, 0)),               # b1 (resident)
            pl.BlockSpec((action_dim, hidden_dim), lambda i: (0, 0)),      # W2 (resident)
            pl.BlockSpec((action_dim, 1), lambda i: (0, 0)),               # b2 (resident)
            pl.BlockSpec((action_dim, cols_per_block), lambda i: (0, i)),  # dropout bits
        ],
        out_specs=pl.BlockSpec((action_dim, cols_per_block), lambda i: (0, i)),
        compiler_params=pltpu.CompilerParams(
            dimension_semantics=("parallel",)),
    )(xt, w1.astype(jnp.bfloat16), b1, w2.astype(jnp.bfloat16), b2, bits)

    # Back to the module's (step, batch, action) layout.
    out = out_t.reshape(action_dim, nb, batch, steps_per_block)
    out = jnp.transpose(out, (1, 3, 2, 0)).reshape(num_steps, batch, action_dim)
    return out


def init_params(key, state_dim, action_dim):
    """Deterministic init mirroring nn.Linear's U(-1/sqrt(fan_in), 1/sqrt(fan_in)).

    Weights are kept in torch layout (out_features, in_features); biases as
    column vectors (out_features, 1) for the transposed-orientation kernel.
    """
    hidden_dim = int(math.sqrt(state_dim * action_dim))
    k1, k2, k3, k4 = jax.random.split(key, 4)
    lim1 = 1.0 / math.sqrt(state_dim)
    lim2 = 1.0 / math.sqrt(hidden_dim)
    w1 = jax.random.uniform(k1, (hidden_dim, state_dim), jnp.float32, -lim1, lim1)
    b1 = jax.random.uniform(k2, (hidden_dim, 1), jnp.float32, -lim1, lim1)
    w2 = jax.random.uniform(k3, (action_dim, hidden_dim), jnp.float32, -lim2, lim2)
    b2 = jax.random.uniform(k4, (action_dim, 1), jnp.float32, -lim2, lim2)
    return w1, b1, w2, b2


if __name__ == "__main__":
    state_dim, action_dim, batch = 16, 4, 2        # hidden = int(sqrt(16*4)) = 8
    num_steps, steps_per_block = 256, 128          # grid=(2,), MXU/lane dim = 256/block

    key = jax.random.PRNGKey(0)
    kx, kp, kd = jax.random.split(key, 3)
    x_steps = jax.random.normal(kx, (num_steps, batch, state_dim), dtype=jnp.float32)
    w1, b1, w2, b2 = init_params(kp, state_dim, action_dim)

    out = reinforce_policy_forward(x_steps, w1, b1, w2, b2, kd,
                                   steps_per_block=steps_per_block)
    out = jax.block_until_ready(out)

    assert out.shape == (num_steps, batch, action_dim)
    assert out.dtype == jnp.float32
    # log_softmax over dim=0 (the per-step batch axis): exp(out) must sum to 1
    # along that axis for every step and action column.
    col_sums = jnp.sum(jnp.exp(out), axis=1)
    assert bool(jnp.all(jnp.abs(col_sums - 1.0) < 1e-4))

    print("KERNEL_OK")
</pallas_src>

<mosaic_0001>
module attributes {stable_mosaic.version = 11 : i64} {
  func.func @_policy_fwd_kernel(%arg0: i32, %arg1: memref<16x256xf32, #tpu.memory_space<vmem>>, %arg2: memref<8x16xbf16, #tpu.memory_space<vmem>>, %arg3: memref<8x1xf32, #tpu.memory_space<vmem>>, %arg4: memref<4x8xbf16, #tpu.memory_space<vmem>>, %arg5: memref<4x1xf32, #tpu.memory_space<vmem>>, %arg6: memref<4x256xi32, #tpu.memory_space<vmem>>, %arg7: memref<4x256xf32, #tpu.memory_space<vmem>>) attributes {dimension_semantics = [#tpu.dimension_semantics<parallel>], iteration_bounds = array<i64: 2>, scalar_prefetch = 0 : i64, scratch_operands = 0 : i64, tpu.core_type = #tpu.core_type<tc>, window_params = [{transform_indices = @transform_0, window_bounds = array<i64: 16, 256>}, {pipeline_mode = #tpu.pipeline_mode<synchronous>, transform_indices = @transform_1, window_bounds = array<i64: 8, 16>}, {pipeline_mode = #tpu.pipeline_mode<synchronous>, transform_indices = @transform_2, window_bounds = array<i64: 8, 1>}, {pipeline_mode = #tpu.pipeline_mode<synchronous>, transform_indices = @transform_3, window_bounds = array<i64: 4, 8>}, {pipeline_mode = #tpu.pipeline_mode<synchronous>, transform_indices = @transform_4, window_bounds = array<i64: 4, 1>}, {transform_indices = @transform_5, window_bounds = array<i64: 4, 256>}, {transform_indices = @transform_6, window_bounds = array<i64: 4, 256>}]} {
    %c0 = arith.constant 0 : index
    %c0_0 = arith.constant 0 : index
    %0 = vector.load %arg1[%c0, %c0_0] : memref<16x256xf32, #tpu.memory_space<vmem>>, vector<16x256xf32>
    %c0_1 = arith.constant 0 : index
    %c0_2 = arith.constant 0 : index
    %1 = vector.load %arg2[%c0_1, %c0_2] : memref<8x16xbf16, #tpu.memory_space<vmem>>, vector<8x16xbf16>
    %2 = arith.truncf %0 : vector<16x256xf32> to vector<16x256xbf16>
    %cst = arith.constant dense<0.000000e+00> : vector<8x256xf32>
    %3 = tpu.matmul %1, %2, %cst {dimension_numbers = #tpu.dot_dimension_numbers<[1], [0], [0], [1], [0, 0, 1, 1], [], []>} : vector<8x16xbf16>, vector<16x256xbf16>, vector<8x256xf32> -> vector<8x256xf32>
    %c0_3 = arith.constant 0 : index
    %c0_4 = arith.constant 0 : index
    %4 = vector.load %arg3[%c0_3, %c0_4] : memref<8x1xf32, #tpu.memory_space<vmem>>, vector<8x1xf32>
    %5 = vector.broadcast %4 : vector<8x1xf32> to vector<8x256xf32>
    %6 = arith.addf %3, %5 : vector<8x256xf32>
    %7 = math.tanh %6 : vector<8x256xf32>
    %c0_5 = arith.constant 0 : index
    %c0_6 = arith.constant 0 : index
    %8 = vector.load %arg4[%c0_5, %c0_6] : memref<4x8xbf16, #tpu.memory_space<vmem>>, vector<4x8xbf16>
    %9 = arith.truncf %7 : vector<8x256xf32> to vector<8x256xbf16>
    %cst_7 = arith.constant dense<0.000000e+00> : vector<4x256xf32>
    %10 = tpu.matmul %8, %9, %cst_7 {dimension_numbers = #tpu.dot_dimension_numbers<[1], [0], [0], [1], [0, 0, 1, 1], [], []>} : vector<4x8xbf16>, vector<8x256xbf16>, vector<4x256xf32> -> vector<4x256xf32>
    %c0_8 = arith.constant 0 : index
    %c0_9 = arith.constant 0 : index
    %11 = vector.load %arg5[%c0_8, %c0_9] : memref<4x1xf32, #tpu.memory_space<vmem>>, vector<4x1xf32>
    %12 = vector.broadcast %11 : vector<4x1xf32> to vector<4x256xf32>
    %13 = arith.addf %10, %12 : vector<4x256xf32>
    %c0_10 = arith.constant 0 : index
    %c0_11 = arith.constant 0 : index
    %14 = vector.load %arg6[%c0_10, %c0_11] : memref<4x256xi32, #tpu.memory_space<vmem>>, vector<4x256xi32>
    %c31_i32 = arith.constant 31 : i32
    %15 = vector.broadcast %c31_i32 : i32 to vector<4x256xi32>
    %16 = arith.shrui %14, %15 : vector<4x256xi32>
    %17 = arith.uitofp %16 : vector<4x256xi32> to vector<4x256xf32>
    %cst_12 = arith.constant 2.000000e+00 : f32
    %18 = vector.broadcast %cst_12 : f32 to vector<4x256xf32>
    %19 = arith.mulf %17, %18 : vector<4x256xf32>
    %20 = arith.mulf %13, %19 : vector<4x256xf32>
    %21 = vector.extract_strided_slice %20 {offsets = [0, 0], sizes = [4, 128], strides = [1, 1]} : vector<4x256xf32> to vector<4x128xf32>
    %22 = vector.extract_strided_slice %20 {offsets = [0, 128], sizes = [4, 128], strides = [1, 1]} : vector<4x256xf32> to vector<4x128xf32>
    %23 = arith.maximumf %21, %22 : vector<4x128xf32>
    %24 = arith.subf %21, %23 : vector<4x128xf32>
    %25 = math.exp %24 : vector<4x128xf32>
    %26 = arith.subf %22, %23 : vector<4x128xf32>
    %27 = math.exp %26 : vector<4x128xf32>
    %28 = arith.addf %25, %27 : vector<4x128xf32>
    %29 = math.log %28 : vector<4x128xf32>
    %30 = arith.addf %23, %29 : vector<4x128xf32>
    %31 = arith.subf %21, %30 : vector<4x128xf32>
    %c0_13 = arith.constant 0 : index
    %c0_14 = arith.constant 0 : index
    %32 = vector.load %arg7[%c0_13, %c0_14] : memref<4x256xf32, #tpu.memory_space<vmem>>, vector<4x128xf32>
    tpu.vector_store %arg7[%c0_13, %c0_14], %31 {strides = array<i32>} : memref<4x256xf32, #tpu.memory_space<vmem>>, vector<4x128xf32>,
    %33 = arith.subf %22, %30 : vector<4x128xf32>
    %c0_15 = arith.constant 0 : index
    %c128 = arith.constant 128 : index
    %34 = vector.load %arg7[%c0_15, %c128] : memref<4x256xf32, #tpu.memory_space<vmem>>, vector<4x128xf32>
    tpu.vector_store %arg7[%c0_15, %c128], %33 {strides = array<i32>} : memref<4x256xf32, #tpu.memory_space<vmem>>, vector<4x128xf32>,
    return
  }
  func.func @transform_0(%arg0: i32) -> (i32, i32) {
    %c0_i32 = arith.constant 0 : i32
    %c0_i32_0 = arith.constant 0 : i32
    return %c0_i32, %arg0 : i32, i32
  }
  func.func @transform_1(%arg0: i32) -> (i32, i32) {
    %c0_i32 = arith.constant 0 : i32
    %c0_i32_0 = arith.constant 0 : i32
    %c0_i32_1 = arith.constant 0 : i32
    return %c0_i32, %c0_i32_0 : i32, i32
  }
  func.func @transform_2(%arg0: i32) -> (i32, i32) {
    %c0_i32 = arith.constant 0 : i32
    %c0_i32_0 = arith.constant 0 : i32
    %c0_i32_1 = arith.constant 0 : i32
    return %c0_i32, %c0_i32_0 : i32, i32
  }
  func.func @transform_3(%arg0: i32) -> (i32, i32) {
    %c0_i32 = arith.constant 0 : i32
    %c0_i32_0 = arith.constant 0 : i32
    %c0_i32_1 = arith.constant 0 : i32
    return %c0_i32, %c0_i32_0 : i32, i32
  }
  func.func @transform_4(%arg0: i32) -> (i32, i32) {
    %c0_i32 = arith.constant 0 : i32
    %c0_i32_0 = arith.constant 0 : i32
    %c0_i32_1 = arith.constant 0 : i32
    return %c0_i32, %c0_i32_0 : i32, i32
  }
  func.func @transform_5(%arg0: i32) -> (i32, i32) {
    %c0_i32 = arith.constant 0 : i32
    %c0_i32_0 = arith.constant 0 : i32
    return %c0_i32, %arg0 : i32, i32
  }
  func.func @transform_6(%arg0: i32) -> (i32, i32) {
    %c0_i32 = arith.constant 0 : i32
    %c0_i32_0 = arith.constant 0 : i32
    return %c0_i32, %arg0 : i32, i32
  }
}

</mosaic_0001>

<bundles_post_ra>
// kernel: tpu_custom_call.1
= control target key start
LH: loop header
LB: loop body
LE: loop exit
PB: predicated region body
PF: predicated region fallthrough
CT: control target
= control target key end

     0   :  { %s991_s0 = inlined_call_operand.hbm [shape: f32[16,512], index: 0, kind: input, shape index: {}]   ;;  %s992_s1 = inlined_call_operand.vmem [shape: bf16[8,16], index: 1, kind: input, shape index: {}]   ;;  %s993_s2 = inlined_call_operand.vmem [shape: f32[8,1], index: 2, kind: input, shape index: {}]   ;;  %s994_s3 = inlined_call_operand.vmem [shape: bf16[4,8], index: 3, kind: input, shape index: {}]   ;;  %s995_s4 = inlined_call_operand.vmem [shape: f32[4,1], index: 4, kind: input, shape index: {}]   ;;  %s996_s5 = inlined_call_operand.hbm [shape: u32[4,512], index: 5, kind: input, shape index: {}]   ;;  %s997_s6 = inlined_call_operand.hbm [shape: f32[4,512], index: 6, kind: output, shape index: {}]  }
   0x1   :  { %1001 = sst [smem:[#allocation14_spill]] %s991_s0 }
   0x2   :  { %11 = vsyncpa [#allocation3], 0 }
   0x3   :  { %13 = vsyncpa [#allocation3 + $0x1], 0 }
   0x4   :  { %14 = vsyncpa [#allocation6], 0 }
   0x5   :  { %16 = vsyncpa [#allocation6 + $0x1], 0 }
   0x6   :  { %17 = vsyncpa [#allocation4], 0 }
   0x7   :  { %19 = vsyncpa [#allocation4 + $0x1], 0  ;;  %s811_s21 = smov 0   ;;  %s813_s22 = smov 0  }
   0x8   :  { %s815_s23 = smov 0   ;;  %s817_s24 = smov 0  }
   0x9 LB: > { %1002 = sst [smem:[#allocation11_spill]] %s766_s23  ;;  %s832_s25 = sadd.s32 4294967295, %s770_s24   ;;  %s770_s24 = sphi %s817_s24, %s1012_s24   ;;  %s766_s23 = sphi %s815_s23, %s1014_s23   ;;  %s762_s22 = sphi %s813_s22, %s1016_s22   ;;  %s758_s21 = sphi %s811_s21, %s1015_s21  }
   0xa   : > { %s549_s26 = sadd.s32 4294967294, %s770_s24   ;;  %s836_s27 = sadd.s32 1, %s770_s24  }
   0xb   : > { %1003 = sst [smem:[#allocation12_spill]] %s836_s27  ;;  %s32_s28 = sadd.s32 1, %s766_s23 }
   0xc   : > { %s29_s29 = ssub.s32 %s770_s24, %s836_s27  ;;  %p39_p0 = scmp.ne.s32.totalorder %s766_s23, %s762_s22 }
   0xd   : > { %p30_p1 = scmp.eq.s32.totalorder %s29_s29, 0  ;;  %p40_p2 = scmp.eq.s32.totalorder %s770_s24, 0 }
   0xe   : > { %p45_p3 = scmp.ne.s32.totalorder %s762_s22, %s758_s21  ;;  %p46_p4 = scmp.eq.s32.totalorder %s832_s25, 0 }
   0xf   : > { %s848_s30 = scalar_select %p30_p1, %s766_s23, %s32_s28  }
  0x10   : > { %p850_p5 = por %p40_p2, %p39_p0  ;;  %p854_p6 = por %p46_p4, %p45_p3 }
  0x11   : > { %1004 = sst [smem:[#allocation13_spill]] %s848_s30  ;;  %p179_p7 = scmp.eq.s32.totalorder %s832_s25, 1 }
  0x12   : > { %p185_p8 = scmp.eq.s32.totalorder %s549_s26, 1  ;;  %p551_p9 = scmp.ge.s32.totalorder %s770_s24, 2 }
  0x13   : > { %p591_p10 = scmp.lt.s32.totalorder %s770_s24, 2  ;;  %p861_p11 = por %p179_p7, %p39_p0 }
  0x14   : > { %p865_p12 = por %p185_p8, %p45_p3  ;;  %s870_s11 = sand.u32 1, %s766_s23  }
  0x15   : > { %s571_s12 = sshll.u32 %s770_s24, 4  ;;  %s552_s13 = sshll.u32 %s870_s11, 5 }
  0x16   : > { %s1009_s0 = sld [smem:[#allocation14_spill]]  ;;  %s221_s18 = scalar_lea.vmem [#allocation2], %s552_s13 }
  0x17   : > { %s229_s19 = sshll.u32 %s221_s18, 4  ;;  %p879_p13 = pnand %p591_p10, %p850_p5  ;;  %s230_s19 = int_to_ptr.vmem [resolvable:$true] %s229_s19 }
  0x18   : > { %p558_p0 = scmp.ge.s32.totalorder %s770_s24, 1  ;;  %s218_s26 = scalar_lea.sflag [#allocation3], %s870_s11 }
  0x19   : > { %p644_p2 = pneg %p879_p13 }
  0x1c   : > { %s226_s16 = scalar_lea.hbm %s1009_s0, %s571_s12  ;;  %s647_s13 = scalar_lea.hbm %s1009_s0, 64 }
  0x1d   : > { %s227_s17 = sshll.u32 %s226_s16, 4  ;;  %s228_s17 = int_to_ptr.hbm [resolvable:$true] %s227_s17 }
  0x1e   : > { %s640_s28 = sshra.s32 %s228_s17, 4  ;;  %s641_s28 = int_to_ptr.hbm [resolvable:$true] %s640_s28 }
  0x1f   : > { %s642_s29 = scalar_lea.hbm %s641_s28, 32  ;;  %p648_p5 = scmp.lt.s32.totalorder %s641_s28, %s1009_s0 }
  0x20   : > { %p643_p1 = scmp.ne.s32.totalorder %s641_s28, %s642_s29  ;;  %p649_p7 = scmp.lt.s32.totalorder %s647_s13, %s642_s29 }
  0x22   : > { %p645_p3 = pnand %p644_p2, %p643_p1  ;;  %p650_p8 = por %p649_p7, %p648_p5 }
  0x24   : > { %p646_p4 = pneg %p645_p3 }
  0x26   : > { %p651_p10 = pnand %p650_p8, %p646_p4 }
  0x28   : > { %654 = shalt.err (!%p651_p10)
}
  0x29   : > { %s772_s16 = smov 512   ;;  %s773_s18 = smov 256  }
  0x2a   : > { %s774_s30 = smov 16   ;;  %p257_p1 = scmp.lt.s32.totalorder %s770_s24, 3 }
  0x2b   : > { %583 = dma.hbm_to_vmem [thread:$0]  (!%p879_p13), %s228_s17, 512, %s230_s19, %s218_s26, %s772_s16, %s773_s18, %s774_s30  }
  0x2c   : > { %s555_s12 = sshll.u32 %s870_s11, 3  ;;  %s572_s7 = sshll.u32 %s770_s24, 3 }
  0x2d   : > { %p903_p3 = pnand %p558_p0, %p257_p1  ;;  %s248_s14 = scalar_lea.hbm %s996_s5, %s572_s7 }
  0x2e   : > { %s243_s15 = scalar_lea.vmem [#allocation5], %s555_s12  ;;  %s250_s23 = sshll.u32 %s248_s14, 4  ;;  %s251_s23 = int_to_ptr.hbm [resolvable:$true] %s250_s23 }
  0x2f   : > { %s252_s0 = sshll.u32 %s243_s15, 4  ;;  %s240_s27 = scalar_lea.sflag [#allocation6], %s870_s11  ;;  %s253_s0 = int_to_ptr.vmem [resolvable:$true] %s252_s0 }
  0x30   : > { %s670_s30 = sshra.s32 %s251_s23, 4  ;;  %s677_s16 = scalar_lea.hbm %s996_s5, 16  ;;  %s671_s30 = int_to_ptr.hbm [resolvable:$true] %s670_s30 }
  0x31   : > { %s672_s17 = scalar_lea.hbm %s671_s30, 8  ;;  %p678_p7 = scmp.lt.s32.totalorder %s671_s30, %s996_s5 }
  0x32   : > { %p673_p4 = scmp.ne.s32.totalorder %s671_s30, %s672_s17  ;;  %p679_p8 = scmp.lt.s32.totalorder %s677_s16, %s672_s17 }
  0x34   : > { %p675_p0 = pnand %p673_p4, %p644_p2  ;;  %p680_p10 = por %p679_p8, %p678_p7 }
  0x36   : > { %p676_p5 = pneg %p675_p0 }
  0x38   : > { %p681_p1 = pnand %p680_p10, %p676_p5 }
  0x3a   : > { %684 = shalt.err (!%p681_p1)
}
  0x3b   : > { %586 = dma.hbm_to_vmem [thread:$0]  (!%p879_p13), %s251_s23, 128, %s253_s0, %s240_s27  }
  0x3c   : > { %261 = sbr.rel (%p903_p3) target bundleno = 386 (0x182), region = 44  ;;  %s925_s11 = sand.u32 (!%p903_p3), 1, %s762_s22  }
  0x3d   : > { %s559_s12 = sshll.u32 (!%p903_p3), %s925_s11, 5  ;;  %s264_s29 = scalar_lea.sflag (!%p903_p3), [#allocation3], %s925_s11 }
  0x3e   : > { %s267_s13 = scalar_lea.vmem (!%p903_p3), [#allocation2], %s559_s12 }
  0x41   : > { %745 = dma.done.wait (%p854_p6), %s264_s29, 512  }
  0x42   : > { %747 = vsyncadd (%p854_p6), %s264_s29, 4294966784  ;;  %s560_s0 = sshll.u32 %s925_s11, 3  ;;  %s274_s23 = scalar_lea.sflag [#allocation6], %s925_s11 }
  0x43   : > { %s937_s27 = scalar_lea.vmem [#allocation5], %s560_s0 }
  0x44   : > { %749 = dma.done.wait (%p854_p6), %s274_s23, 128  }
  0x45   : > { %751 = vsyncadd (%p854_p6), %s274_s23, 4294967168  ;;  %v775_v0 = vmov 0   ;;  %v316_v1 = vld [vmem:[%s267_s13] sm:$0xff]  ;;  %v318_v2 = vld [vmem:[%s267_s13 + $0x10] sm:$0xff]  ;;  %vm329_vm0 = vcmask 130048   ;;  %vm374_vm1 = vcmask 1043456  }
  0x46   : > { %629 = vset.pattern.permute.xlu0 %v775_v0  ;;  %v317_v3 = vld [vmem:[%s267_s13 + $0x8] sm:$0xff]  ;;  %v321_v4 = vpack.c.bf16 %v318_v2, %v316_v1  ;;  %v319_v5 = vld [vmem:[%s267_s13 + $0x18] sm:$0xff]  ;;  %vm370_vm2 = vcmask 64512   ;;  %s573_s26 = sshll.u32 %s832_s25, 3  ;;  %s311_s12 = scalar_lea.vmem [#allocation7], %s560_s0 }
  0x47   : > { %v323_v6 = vld [vmem:[%s993_s2] sm:$0xff]  ;;  %v322_v7 = vpack.c.bf16 %v319_v5, %v317_v3  ;;  %v407_v24 = vld [vmem:[%s937_s27] sm:$0xff]  ;;  %s451_s7 = scalar_lea.hbm %s997_s6, %s573_s26  ;;  %s453_s29 = sshll.u32 %s311_s12, 4  ;;  %s454_s29 = int_to_ptr.vmem [resolvable:$true] %s453_s29 }
  0x48   : > { %326 = vperm.xlu0 %629, %v323_v6   ;;  %340 = vmatpush.bf16.msra.mxu0 %v321_v4  ;;  %v320_v8 = vld [vmem:[%s992_s1] sm:$0xf]  ;;  %v408_v25 = vshrl.u32 %v407_v24, 31  ;;  %s455_s13 = sshll.u32 %s451_s7, 4  ;;  %s440_s23 = scalar_lea.sflag [#allocation4], %s925_s11  ;;  %s456_s13 = int_to_ptr.hbm [resolvable:$true] %s455_s13 }
  0x49   : > { %353 = vmatpush.bf16.msra.mxu1 %v322_v7  ;;  %v364_v9 = vld [vmem:[%s995_s4] sm:$0xf]  ;;  %s714_s25 = sshra.s32 %s456_s13, 4  ;;  %s720_s0 = scalar_lea.hbm %s997_s6, 16  ;;  %s715_s25 = int_to_ptr.hbm [resolvable:$true] %s714_s25 }
  0x4a   : > { %v361_v23 = vld [vmem:[%s994_s3] sm:$0x3]  ;;  %v409_v26 = vshrl.u32 %v408_v25, 16  ;;  %v410_v27 = vand.u32 65535, %v408_v25  ;;  %s716_s27 = scalar_lea.hbm %s715_s25, 8  ;;  %p721_p3 = scmp.lt.s32.totalorder %s715_s25, %s997_s6 }
  0x4b   : > { %562 = vmatmul.msk.bf16.vlgmr.msra.gmra.mxu0 %vm329_vm0, %v320_v8  ;;  %p717_p6 = scmp.ne.s32.totalorder %s715_s25, %s716_s27  ;;  %p722_p4 = scmp.lt.s32.totalorder %s720_s0, %s716_s27 }
  0x4c   : > { %563 = vmatmul.msk.bf16.vlgmr.msra.gmra.mxu1 %vm329_vm0, %v320_v8  ;;  %v411_v28 = vcvt.s32.f32 %v409_v26  ;;  %v413_v30 = vcvt.s32.f32 %v410_v27 }
  0x4d   : > { %p718_p13 = pnand %p717_p6, %p861_p11  ;;  %p723_p0 = por %p722_p4, %p721_p3 }
  0x4e   : > { %v412_v29 = vmul.f32 65536.0, %v411_v28 }
  0x4f   : > { %p719_p2 = pneg %p718_p13 }
  0x50   : > { %367 = vperm.xlu0 %629, %v364_v9   ;;  %v414_v31 = vadd.f32 %v413_v30, %v412_v29 }
  0x51   : > { %p724_p5 = pnand %p723_p0, %p719_p2 }
  0x52   : > { %v415_v32 = vmul.f32 2.0, %v414_v31 }
  0x54   : > { %417 = vst [vmem:[#allocation1] ss:$2 sm:$0xff] %v415_v32 }
  0x5b   : > { %v418_v35 = vld.sshfl [vmem:[#allocation1] sm:$0xff pattern:$0x75316420]  ;;  %v419_v38 = vld.sshfl [vmem:[#allocation1 + $0x8] sm:$0xff pattern:$0x75316420] }
  0xba   : > { %v327_v10 = vpop.permute.xlu0 %326 }
  0xc2   : > { %v368_v33 = vpop.permute.xlu0 %367 }
  0xc8   : > { %v342_v11 = vpop.f32.mrf.mxu0 }
  0xc9   : > { %v343_v12 = vadd.f32 %v342_v11, %v327_v10  ;;  %v355_v13 = vpop.f32.mrf.mxu1 }
  0xca   : > { %v356_v14 = vadd.f32 %v355_v13, %v327_v10 }
  0xcb   : > { %630 = vtanh.f32 %v343_v12 }
  0xcc   : > { %632 = vtanh.f32 %v356_v14 }
  0xd0   : > { %v344_v15 = vpop.f32.mrf.mxu0 }
  0xd1   : > { %v631_v16 = vpop.eup %630  ;;  %v357_v17 = vpop.f32.mrf.mxu1 }
  0xd2   : > { %v633_v18 = vpop.eup %632  ;;  %v362_v19 = vpack.c.bf16 %v631_v16, %v631_v16 }
  0xd3   : > { %v363_v20 = vpack.c.bf16 %v633_v18, %v633_v18 }
  0xd4   : > { %v376_v21 = vsel %vm374_vm1, %v362_v19, 0 }
  0xd5   : > { %388 = vmatpush.bf16.msra.mxu2 %v376_v21  ;;  %v379_v22 = vsel %vm374_vm1, %v363_v20, 0 }
  0xd6   : > { %401 = vmatpush.bf16.msra.mxu3 %v379_v22 }
  0xd8   : > { %564 = vmatmul.msk.bf16.vlgmr.msra.gmra.mxu2 %vm370_vm2, %v361_v23 }
  0xd9   : > { %565 = vmatmul.msk.bf16.vlgmr.msra.gmra.mxu3 %vm370_vm2, %v361_v23 }
 0x15b   : > { %v390_v34 = vpop.f32.mrf.mxu2 }
 0x15c   : > { %v391_v36 = vadd.f32 %v390_v34, %v368_v33  ;;  %v403_v37 = vpop.f32.mrf.mxu3 }
 0x15d   : > { %v404_v39 = vadd.f32 %v403_v37, %v368_v33 }
 0x15e   : > { %v422_v40 = vmul.f32 %v418_v35, %v391_v36 }
 0x15f   : > { %v423_v41 = vmul.f32 %v419_v38, %v404_v39 }
 0x161   : > { %v424_v42 = vmax.f32 %v422_v40, %v423_v41 }
 0x163   : > { %v425_v43 = vsub.f32 %v422_v40, %v424_v42  ;;  %v428_v44 = vsub.f32 %v423_v41, %v424_v42  ;;  %v392_v45 = vpop.f32.mrf.mxu2 }
 0x164   : > { %v405_v46 = vpop.f32.mrf.mxu3 }
 0x165   : > { %v426_v47 = vmul.f32 1.442695, %v425_v43  ;;  %v429_v48 = vmul.f32 1.442695, %v428_v44 }
 0x167   : > { %634 = vpow2.f32 %v426_v47 }
 0x168   : > { %636 = vpow2.f32 %v429_v48 }
 0x16d   : > { %v635_v49 = vpop.eup %634 }
 0x16e   : > { %v637_v50 = vpop.eup %636 }
 0x16f   : > { %v431_v51 = vadd.f32 %v637_v50, %v635_v49 }
 0x171   : > { %638 = vlog2.f32 %v431_v51 }
 0x177   : > { %v639_v52 = vpop.eup %638 }
 0x178   : > { %v433_v53 = vmul.f32 0.6931472, %v639_v52 }
 0x17a   : > { %v434_v54 = vadd.f32 %v433_v53, %v424_v42 }
 0x17c   : > { %v435_v55 = vsub.f32 %v422_v40, %v434_v54  ;;  %v437_v56 = vsub.f32 %v423_v41, %v434_v54 }
 0x17e   : > { %436 = vst [vmem:[%s311_s12] sm:$0xf] %v435_v55 }
 0x17f   : > { %438 = vst [vmem:[%s311_s12 + $0x4] sm:$0xf] %v437_v56 }
 0x180   : > { %727 = shalt.err (!%p724_p5)
}
 0x181   : > { %578 = dma.vmem_to_hbm [thread:$0]  (%p861_p11), %s454_s29, 128, %s456_s13, %s440_s23  }
 0x182 PF: > { %s467_s11 = sand.u32 1, %s758_s21   ;;  %p588_p7 = pnand %p551_p9, %p865_p12 }
 0x183   : > { %s468_s8 = scalar_lea.sflag [#allocation4], %s467_s11 }
 0x184   : > { %p589_p8 = pneg %p588_p7 }
 0x186   : > { %753 = dma.done.wait (%p589_p8), %s468_s8, 128  }
 0x187   : > { %755 = vsyncadd (%p589_p8), %s468_s8, 4294967168  ;;  %s1012_s24 = sld [smem:[#allocation12_spill]]  ;;  %s1015_s21 = smov %s762_s22 }
 0x188   : > { %s1013_s30 = sld [smem:[#allocation11_spill]] }
 0x189   : > { %s1014_s23 = sld [smem:[#allocation13_spill]] }
 0x18d   : > { %p22_p10 = scmp.ge.s32.totalorder %s1012_s24, 4  }
 0x18e   : > { %s1016_s22 = smov %s1013_s30 }
 0x18f   :  { %24 = sbr.rel (!%p22_p10) target bundleno = 9 (0x9), region = 102 }
 0x194   :  { %474 = vsyncpa [#allocation3], 1 }
 0x195   :  { %476 = vsyncpa [#allocation3 + $0x1], 1 }
 0x196   :  { %477 = vsyncpa [#allocation6], 1 }
 0x197   :  { %479 = vsyncpa [#allocation6 + $0x1], 1 }
 0x198   :  { %480 = vsyncpa [#allocation4], 1 }
 0x199   :  { %482 = vsyncpa [#allocation4 + $0x1], 1 }

</bundles_post_ra>
